<compile_context>
chip_gen: v7x
topology: tpu7x:2x2x1
jax: 0.10.0
libtpu: 0.0.40
codegen_flags: <defaults>
</compile_context>

<pallas_src>
import functools

import jax
import jax.numpy as jnp
from jax.experimental import pallas as pl
from jax.experimental.pallas import tpu as pltpu


def _mlp_kernel(x_ref, *refs, n_layers, activation, output_activation,
                output_scale):
    """Fused forward pass: refs = (w1, b1, w2, b2, ..., wN, bN, out)."""
    o_ref = refs[-1]
    param_refs = refs[:-1]

    h = x_ref[...]
    for i in range(n_layers):
        w = param_refs[2 * i][...]
        b = param_refs[2 * i + 1][...]          # (1, out) — broadcasts over batch
        h = jnp.dot(h, w, preferred_element_type=jnp.float32) + b
        if i < n_layers - 1:
            h = activation(h)
        else:
            if output_activation is not None:
                h = output_activation(h)
            if output_scale != 1.0:
                h = h * output_scale
    o_ref[...] = h.astype(o_ref.dtype)


def mlp_forward(x, params, *, activation=jnp.tanh, output_activation=None,
                output_scale=1.0, batch_tile=256):
    """Run the whole MLP in a single Pallas kernel.

    params: list of (w, b) with w: (in, out) f32 and b: (1, out) f32.
    """
    B, In = x.shape
    Out = params[-1][0].shape[1]

    flat = []
    for w, b in params:
        flat.append(w)
        flat.append(b)

    kernel = functools.partial(
        _mlp_kernel,
        n_layers=len(params),
        activation=activation,
        output_activation=output_activation,
        output_scale=float(output_scale),
    )
    out_shape = jax.ShapeDtypeStruct((B, Out), x.dtype)

    # Pick a batch tile only when the batch is big enough to be worth tiling
    # and divides cleanly; otherwise a single grid-less full-block call.
    bt = None
    for cand in (batch_tile, 128, 64, 32, 16, 8):
        if B >= 2 * cand and B % cand == 0:
            bt = cand
            break

    if bt is None:
        # Small batch: one fused kernel, everything as full-extent VMEM blocks,
        # no grid (avoids per-step pipeline bookkeeping).
        return pl.pallas_call(kernel, out_shape=out_shape)(x, *flat)

    # Large batch: tile the batch axis; weights/biases pinned to one block so
    # they are fetched once and stay resident across batch tiles.
    in_specs = [pl.BlockSpec((bt, In), lambda i: (i, 0))]
    for w, b in params:
        in_specs.append(pl.BlockSpec(w.shape, lambda i: (0, 0)))
        in_specs.append(pl.BlockSpec(b.shape, lambda i: (0, 0)))
    out_specs = pl.BlockSpec((bt, Out), lambda i: (i, 0))

    return pl.pallas_call(
        kernel,
        out_shape=out_shape,
        grid=(B // bt,),
        in_specs=in_specs,
        out_specs=out_specs,
        compiler_params=pltpu.CompilerParams(
            dimension_semantics=("parallel",)  # shard batch tiles across TCs
        ),
    )(x, *flat)


class MLP:
    """JAX/Pallas re-implementation of the PyTorch MLP module."""

    def __init__(self, layers, key, activation=jnp.tanh, output_activation=None,
                 output_scale=1.0, output_squeeze=False):
        self.activation = activation
        self.output_activation = output_activation
        self.output_scale = float(output_scale)
        self.output_squeeze = output_squeeze
        self.params = []
        for i, out_dim in enumerate(layers[1:]):
            in_dim = layers[i]
            key, wkey = jax.random.split(key)
            # nn.Linear default init: U(-1/sqrt(in), 1/sqrt(in)); bias zeroed
            # by the module's nn.init.zeros_. Bias stored pre-reshaped (1, out).
            bound = 1.0 / jnp.sqrt(jnp.float32(in_dim))
            w = jax.random.uniform(
                wkey, (in_dim, out_dim), jnp.float32, -bound, bound
            )
            b = jnp.zeros((1, out_dim), jnp.float32)
            self.params.append((w, b))

    def __call__(self, x):
        out = mlp_forward(
            x, self.params,
            activation=self.activation,
            output_activation=self.output_activation,
            output_scale=self.output_scale,
        )
        if self.output_squeeze:
            out = jnp.squeeze(out)
        return out


def _reference(x, mlp):
    ref = x
    for w, b in mlp.params[:-1]:
        ref = jnp.tanh(ref @ w + b)
    w, b = mlp.params[-1]
    ref = ref @ w + b
    if mlp.output_activation is not None:
        ref = mlp.output_activation(ref)
    return ref * mlp.output_scale


if __name__ == "__main__":
    key = jax.random.PRNGKey(0)
    key, xkey, mkey, bkey = jax.random.split(key, 4)

    obs_dim, hidden, act_dim = 16, 32, 4
    mlp = MLP([obs_dim, hidden, hidden, act_dim], mkey)

    # Small batch: grid-less fused kernel path.
    batch = 2
    x_small = jax.random.normal(xkey, (batch, obs_dim), jnp.float32)
    out_small = mlp(x_small)
    jax.block_until_ready(out_small)
    ref_small = _reference(x_small, mlp)
    assert out_small.shape == (batch, act_dim)
    assert jnp.allclose(out_small, ref_small, atol=1e-5, rtol=1e-5)

    # Larger batch: exercises the batch-tiled "parallel" grid path.
    big_batch = 256
    x_big = jax.random.normal(bkey, (big_batch, obs_dim), jnp.float32)
    out_big = mlp(x_big)
    jax.block_until_ready(out_big)
    ref_big = _reference(x_big, mlp)
    assert out_big.shape == (big_batch, act_dim)
    assert jnp.allclose(out_big, ref_big, atol=1e-5, rtol=1e-5)

    print("KERNEL_OK")
</pallas_src>

<mosaic_0001>
module attributes {stable_mosaic.version = 11 : i64} {
  func.func @_mlp_kernel(%arg0: memref<2x16xf32, #tpu.memory_space<vmem>>, %arg1: memref<16x32xf32, #tpu.memory_space<vmem>>, %arg2: memref<1x32xf32, #tpu.memory_space<vmem>>, %arg3: memref<32x32xf32, #tpu.memory_space<vmem>>, %arg4: memref<1x32xf32, #tpu.memory_space<vmem>>, %arg5: memref<32x4xf32, #tpu.memory_space<vmem>>, %arg6: memref<1x4xf32, #tpu.memory_space<vmem>>, %arg7: memref<2x4xf32, #tpu.memory_space<vmem>>) attributes {dimension_semantics = [], scalar_prefetch = 0 : i64, scratch_operands = 0 : i64, tpu.core_type = #tpu.core_type<tc>} {
    %c0 = arith.constant 0 : index
    %c0_0 = arith.constant 0 : index
    %0 = vector.load %arg0[%c0, %c0_0] : memref<2x16xf32, #tpu.memory_space<vmem>>, vector<2x16xf32>
    %c0_1 = arith.constant 0 : index
    %c0_2 = arith.constant 0 : index
    %1 = vector.load %arg1[%c0_1, %c0_2] : memref<16x32xf32, #tpu.memory_space<vmem>>, vector<16x32xf32>
    %c0_3 = arith.constant 0 : index
    %c0_4 = arith.constant 0 : index
    %2 = vector.load %arg2[%c0_3, %c0_4] : memref<1x32xf32, #tpu.memory_space<vmem>>, vector<1x32xf32>
    %cst = arith.constant dense<0.000000e+00> : vector<2x32xf32>
    %3 = tpu.matmul %0, %1, %cst {dimension_numbers = #tpu.dot_dimension_numbers<[1], [0], [0], [1], [0, 0, 1, 1], [], []>} : vector<2x16xf32>, vector<16x32xf32>, vector<2x32xf32> -> vector<2x32xf32>
    %4 = vector.broadcast %2 : vector<1x32xf32> to vector<2x32xf32>
    %5 = arith.addf %3, %4 : vector<2x32xf32>
    %6 = math.tanh %5 : vector<2x32xf32>
    %c0_5 = arith.constant 0 : index
    %c0_6 = arith.constant 0 : index
    %7 = vector.load %arg3[%c0_5, %c0_6] : memref<32x32xf32, #tpu.memory_space<vmem>>, vector<32x32xf32>
    %c0_7 = arith.constant 0 : index
    %c0_8 = arith.constant 0 : index
    %8 = vector.load %arg4[%c0_7, %c0_8] : memref<1x32xf32, #tpu.memory_space<vmem>>, vector<1x32xf32>
    %cst_9 = arith.constant dense<0.000000e+00> : vector<2x32xf32>
    %9 = tpu.matmul %6, %7, %cst_9 {dimension_numbers = #tpu.dot_dimension_numbers<[1], [0], [0], [1], [0, 0, 1, 1], [], []>} : vector<2x32xf32>, vector<32x32xf32>, vector<2x32xf32> -> vector<2x32xf32>
    %10 = vector.broadcast %8 : vector<1x32xf32> to vector<2x32xf32>
    %11 = arith.addf %9, %10 : vector<2x32xf32>
    %12 = math.tanh %11 : vector<2x32xf32>
    %c0_10 = arith.constant 0 : index
    %c0_11 = arith.constant 0 : index
    %13 = vector.load %arg5[%c0_10, %c0_11] : memref<32x4xf32, #tpu.memory_space<vmem>>, vector<32x4xf32>
    %c0_12 = arith.constant 0 : index
    %c0_13 = arith.constant 0 : index
    %14 = vector.load %arg6[%c0_12, %c0_13] : memref<1x4xf32, #tpu.memory_space<vmem>>, vector<1x4xf32>
    %cst_14 = arith.constant dense<0.000000e+00> : vector<2x4xf32>
    %15 = tpu.matmul %12, %13, %cst_14 {dimension_numbers = #tpu.dot_dimension_numbers<[1], [0], [0], [1], [0, 0, 1, 1], [], []>} : vector<2x32xf32>, vector<32x4xf32>, vector<2x4xf32> -> vector<2x4xf32>
    %16 = vector.broadcast %14 : vector<1x4xf32> to vector<2x4xf32>
    %17 = arith.addf %15, %16 : vector<2x4xf32>
    %c0_15 = arith.constant 0 : index
    %c0_16 = arith.constant 0 : index
    %18 = vector.load %arg7[%c0_15, %c0_16] : memref<2x4xf32, #tpu.memory_space<vmem>>, vector<2x4xf32>
    tpu.vector_store %arg7[%c0_15, %c0_16], %17 {strides = array<i32>} : memref<2x4xf32, #tpu.memory_space<vmem>>, vector<2x4xf32>,
    return
  }
}

</mosaic_0001>

<bundles_post_ra>
// kernel: tpu_custom_call.1
= control target key start
LH: loop header
LB: loop body
LE: loop exit
PB: predicated region body
PF: predicated region fallthrough
CT: control target
= control target key end

     0   :  { %12 = vsyncpa [#allocation3], 0  ;;  %s544_s0 = inlined_call_operand.vmem [shape: f32[2,16], index: 0, kind: input, shape index: {}]   ;;  %s545_s1 = inlined_call_operand.hbm [shape: f32[16,32], index: 1, kind: input, shape index: {}]   ;;  %s546_s2 = inlined_call_operand.vmem [shape: f32[1,32], index: 2, kind: input, shape index: {}]   ;;  %s547_s3 = inlined_call_operand.vmem [shape: f32[32,32], index: 3, kind: input, shape index: {}]   ;;  %s548_s4 = inlined_call_operand.vmem [shape: f32[1,32], index: 4, kind: input, shape index: {}]   ;;  %s549_s5 = inlined_call_operand.vmem [shape: f32[32,4], index: 5, kind: input, shape index: {}]   ;;  %s550_s6 = inlined_call_operand.vmem [shape: f32[1,4], index: 6, kind: input, shape index: {}]   ;;  %s551_s7 = inlined_call_operand.hbm [shape: f32[2,4], index: 7, kind: output, shape index: {}]  }
   0x1   :  { %13 = vsyncpa [#allocation4], 0  ;;  %s435_s24 = smov [#allocation2]   ;;  %s387_s28 = scalar_lea.hbm %s545_s1, 256 }
   0x2   :  { %s21_s25 = sshll.u32 %s435_s24, 4  ;;  %p388_p0 = scmp.ne.s32.totalorder %s545_s1, %s387_s28  ;;  %s22_s25 = int_to_ptr.vmem [resolvable:$true] %s21_s25 }
   0x3   :  { %p391_p1 = scmp.lt.u32.totalorder %s387_s28, %s545_s1 }
   0x5   :  { %p393_p2 = pnand %p391_p1, %p388_p0 }
   0x7   :  { %396 = shalt.err (!%p393_p2)
}
   0x8   :  { %s397_s10 = scalar_lea.vmem %s22_s25, 256  ;;  %p402_p4 = scmp.lt.s32.totalorder %s22_s25, %s22_s25 }
   0x9   :  { %p398_p3 = scmp.ne.s32.totalorder %s22_s25, %s397_s10  ;;  %p403_p5 = scmp.lt.s32.totalorder %s397_s10, %s397_s10 }
   0xb   :  { %p404_p6 = por %p403_p5, %p402_p4 }
   0xd   :  { %p405_p7 = pnand %p404_p6, %p398_p3 }
   0xf   :  { %408 = shalt.err (!%p405_p7)
}
  0x10   :  { %s436_s11 = smov 128   ;;  %s437_s12 = smov 8  }
  0x11   :  { %27 = dma.hbm_to_vmem [thread:$0]  %s545_s1, 256, %s22_s25, [#allocation3], %s436_s11, %s436_s11, %s437_s12  }
  0x12   :  { %431 = dma.done.wait [#allocation3], 256  }
  0x13   :  { %432 = vsyncadd [#allocation3], 4294967040  ;;  %v438_v0 = vmov 0.0|0.0   ;;  %vm439_vm0 = vmmov 0   ;;  %v440_v1 = vmov 0.0   ;;  %v42_v2 = vld [vmem:[#allocation2] sm:$0xff] }
  0x14   :  { %361 = vmatprep.subr.bf16.mxu0 %v438_v0  ;;  %336 = vmatprep.mubr.msk.f32.mxu0 %vm439_vm0, %v440_v1  ;;  %v43_v3 = vld [vmem:[#allocation2 + $0x8] sm:$0xff]  ;;  %v41_v5 = vld [vmem:[%s544_s0] sm:$0x3]  ;;  %vm51_vm1 = vcmask 130048   ;;  %v128_v8 = vld [vmem:[%s547_s3 + $0x10] sm:$0xff]  ;;  %vm137_vm2 = vcmask 261120  }
  0x15   :  { %364 = vmatprep.subr.bf16.mxu1 %v438_v0  ;;  %347 = vmatprep.mubr.msk.f32.mxu1 %vm439_vm0, %v440_v1  ;;  %v362_v4 = vpack.c.bf16 %v43_v3, %v42_v2  ;;  %v126_v6 = vld [vmem:[%s547_s3] sm:$0xff]  ;;  %v127_v7 = vld [vmem:[%s547_s3 + $0x8] sm:$0xff]  ;;  %v129_v10 = vld [vmem:[%s547_s3 + $0x18] sm:$0xff]  ;;  %vm296_vm3 = vcmask 25600  }
  0x16   :  { %v365_v9 = vpack.c.bf16 %v127_v7, %v126_v6  ;;  %v368_v11 = vpack.c.bf16 %v129_v10, %v128_v8  ;;  %v313_v12 = vld [vmem:[%s546_s2] ss:$0 sm:$0xff]  ;;  %v213_v18 = vld [vmem:[%s549_s5 + $0x8] sm:$0xff]  ;;  %v214_v19 = vld [vmem:[%s549_s5 + $0x10] sm:$0xff] }
  0x17   :  { %363 = vmatpush3.bf16.msra.mxu0 %v362_v4  ;;  %v212_v17 = vld [vmem:[%s549_s5] sm:$0xff]  ;;  %v215_v21 = vld [vmem:[%s549_s5 + $0x18] sm:$0xff]  ;;  %s441_s5 = smov [#allocation5]  }
  0x18   :  { %370 = vmatprep.subr.bf16.mxu0 %v438_v0  ;;  %366 = vmatpush3.bf16.msra.mxu1 %v365_v9  ;;  %v371_v20 = vpack.c.bf16 %v213_v18, %v212_v17  ;;  %v374_v22 = vpack.c.bf16 %v215_v21, %v214_v19  ;;  %v315_v23 = vld [vmem:[%s548_s4] ss:$0 sm:$0xff]  ;;  %s304_s12 = sshll.u32 %s441_s5, 4  ;;  %s305_s12 = int_to_ptr.vmem [resolvable:$true] %s304_s12 }
  0x19   :  { %367 = vmatprep.subr.bf16.mxu1 %v438_v0  ;;  %v317_v28 = vld [vmem:[%s550_s6] ss:$0 sm:$0xff]  ;;  %s409_s4 = scalar_lea.vmem %s305_s12, 32  ;;  %p414_p9 = scmp.lt.s32.totalorder %s305_s12, %s305_s12 }
  0x1a   :  { %337 = vmatmul.mubr.msk.f32.vlgmr.msra.gmra.mrb[0].mxu0 %vm51_vm1, %v41_v5  ;;  %p410_p8 = scmp.ne.s32.totalorder %s305_s12, %s409_s4  ;;  %p415_p10 = scmp.lt.s32.totalorder %s409_s4, %s409_s4 }
  0x1b   :  { %358 = vmatprep.mubr.msk.f32.mxu0 %vm439_vm0, %v440_v1  ;;  %372 = vmatpush3.bf16.msra.mxu0 %v371_v20 }
  0x1c   :  { %369 = vmatpush3.bf16.msra.mxu1 %v368_v11  ;;  %373 = vmatprep.subr.bf16.mxu0 %v438_v0  ;;  %p416_p11 = por %p415_p10, %p414_p9 }
  0x1e   :  { %p417_p12 = pnand %p416_p11, %p410_p8 }
  0x1f   :  { %375 = vmatpush3.bf16.msra.mxu0 %v374_v22 }
  0xed   :  { %v121_v13 = vpop.f32.mrb[0].mxu0 }
  0xee   :  { %v122_v14 = vadd.f32 %v313_v12, %v121_v13  ;;  %v338_v15 = vpop.f32.mrb[1].mxu0 }
  0xf0   :  { %383 = vtanh.f32 %v122_v14 }
  0xfa   :  { %v384_v16 = vpop.eup %383 }
  0xfb   :  { %348 = vmatmul.mubr.msk.f32.vlgmr.msra.gmra.mrb[0].mxu1 %vm137_vm2, %v384_v16 }
 0x1ce   :  { %v207_v24 = vpop.f32.mrb[0].mxu1 }
 0x1cf   :  { %v208_v25 = vadd.f32 %v315_v23, %v207_v24  ;;  %v349_v26 = vpop.f32.mrb[1].mxu1 }
 0x1d1   :  { %385 = vtanh.f32 %v208_v25 }
 0x1db   :  { %v386_v27 = vpop.eup %385 }
 0x1dc   :  { %359 = vmatmul.mubr.msk.f32.vlgmr.msra.gmra.mrb[2].mxu0 %vm137_vm2, %v386_v27 }
 0x2af   :  { %v292_v29 = vpop.f32.mrb[2].mxu0 }
 0x2b0   :  { %v293_v30 = vadd.f32 %v317_v28, %v292_v29  ;;  %v360_v31 = vpop.f32.mrb[3].mxu0 }
 0x2b2   :  { %297 = vst.msk [vmem:[#allocation5] sm:$0x3] %vm296_vm3, %v293_v30 }
 0x2b3   :  { %420 = shalt.err (!%p417_p12)
}
 0x2b4   :  { %s421_s15 = scalar_lea.hbm %s551_s7, 32 }
 0x2b5   :  { %p422_p13 = scmp.ne.s32.totalorder %s551_s7, %s421_s15  ;;  %p425_p0 = scmp.lt.u32.totalorder %s421_s15, %s551_s7 }
 0x2b7   :  { %p427_p1 = pnand %p425_p0, %p422_p13 }
 0x2b9   :  { %430 = shalt.err (!%p427_p1)
}
 0x2ba   :  { %307 = dma.vmem_to_hbm [thread:$0]  %s305_s12, 32, %s551_s7, [#allocation4]  }
 0x2bb   :  { %433 = dma.done.wait [#allocation4], 32  }
 0x2bc   :  { %434 = vsyncadd [#allocation4], 4294967264 }
 0x2bd   :  { %311 = vsyncpa [#allocation3], 1 }
 0x2be   :  { %312 = vsyncpa [#allocation4], 1 }

</bundles_post_ra>
